<compile_context>
chip_gen: v7x
topology: tpu7x:2x2x1
jax: 0.10.0
libtpu: 0.0.40
codegen_flags: <defaults>
</compile_context>

<pallas_src>
import functools

import jax
import jax.numpy as jnp
from jax.experimental import pallas as pl
from jax.experimental.pallas import tpu as pltpu

IN_DIM = 28 * 28      # 784
HIDDEN = 100
OUT_DIM = 10
LANE = 128            # TPU lane width; hidden/output dims are zero-padded to this
IN_DIM_VMEM = 896     # 784 occupies 7 lane-tiles (896 lanes) inside VMEM


def _round_up(n, m):
    return ((n + m - 1) // m) * m


def _mlp_kernel(x_ref, w1_ref, b1_ref, w2_ref, b2_ref, w3_ref, b3_ref, o_ref):
    # x_ref: (tb, 784); w1: (784, 128); w2, w3: (128, 128); biases: (1, 128).
    # Padded lanes carry zero weights/biases -> they stay exactly zero through the
    # ReLU chain and contribute nothing to the logits.
    x = x_ref[...]
    h1 = jnp.dot(x, w1_ref[...], preferred_element_type=jnp.float32) + b1_ref[...]
    h1 = jnp.maximum(h1, 0.0)                                   # ReLU on VPU
    h2 = jnp.dot(h1, w2_ref[...], preferred_element_type=jnp.float32) + b2_ref[...]
    h2 = jnp.maximum(h2, 0.0)                                   # ReLU on VPU
    o_ref[...] = jnp.dot(h2, w3_ref[...], preferred_element_type=jnp.float32) + b3_ref[...]


def prepare_params(params):
    """One-time prep (hoisted out of the forward path).

    PyTorch Linear stores (out, in); the kernel consumes (in, out).  The 100/10-wide
    dims are zero-padded to 128 lanes here, once, instead of per forward call.
    """
    w1, b1, w2, b2, w3, b3 = params
    w1p = jnp.pad(jnp.asarray(w1, jnp.float32).T, ((0, 0), (0, LANE - HIDDEN)))              # (784, 128)
    b1p = jnp.pad(jnp.asarray(b1, jnp.float32), (0, LANE - HIDDEN))[None, :]                 # (1, 128)
    w2p = jnp.pad(jnp.asarray(w2, jnp.float32).T, ((0, LANE - HIDDEN), (0, LANE - HIDDEN)))  # (128, 128)
    b2p = jnp.pad(jnp.asarray(b2, jnp.float32), (0, LANE - HIDDEN))[None, :]                 # (1, 128)
    w3p = jnp.pad(jnp.asarray(w3, jnp.float32).T, ((0, LANE - HIDDEN), (0, LANE - OUT_DIM))) # (128, 128)
    b3p = jnp.pad(jnp.asarray(b3, jnp.float32), (0, LANE - OUT_DIM))[None, :]                # (1, 128)
    return (w1p, b1p, w2p, b2p, w3p, b3p)


@functools.partial(jax.jit, static_argnames=("tile_b",))
def perceptron100_fwd(x_in, prepared, *, tile_b=2048):
    """Forward pass. x_in: (B, 1, 28, 28) (or anything reshapeable to (B, 784)).

    `prepared` comes from prepare_params().  Returns (B, 10) float32 logits with the
    same semantics as the torch module.
    """
    B = x_in.shape[0]
    x = x_in.reshape(B, IN_DIM)                     # same flatten as torch .view; no copy
    if not jnp.issubdtype(x.dtype, jnp.floating):
        x = x.astype(jnp.float32)
    # (If the producer already hands bf16, it is streamed as bf16 — halves HBM bytes
    #  on this HBM-bound kernel — and upcast on-chip; we never force a wrapper cast.)

    w1p, b1p, w2p, b2p, w3p, b3p = prepared

    # Batch tile: multiple of 8 (sublane), capped so the grid keeps >= 2 steps
    # (megacore sharding on v7x needs more than one step on the "parallel" axis).
    # No batch padding in HBM: grid = cdiv(B, tb), Pallas clamps the ragged last
    # block; its OOB rows compute on stale VMEM but their writes are masked and
    # rows are independent, so valid outputs are unaffected.
    tb = min(tile_b, max(8, _round_up(pl.cdiv(B, 2), 8)))
    grid = (pl.cdiv(B, tb),)

    # VMEM budget: double-buffered x tile (896 lanes in VMEM, not 784) +
    # double-buffered output tile + resident weights/biases (x2), plus headroom.
    # Never below 32 MiB (<= every generation's physical VMEM, >= every default
    # scoped limit), raised when the tile needs more.
    x_bytes = 2 * tb * IN_DIM_VMEM * x.dtype.itemsize
    out_bytes = 2 * tb * LANE * 4
    w_bytes = 2 * 4 * (IN_DIM * LANE + 2 * LANE * LANE + 3 * LANE)
    vmem_limit = max(int(1.2 * (x_bytes + out_bytes + w_bytes)) + 4 * 1024 * 1024,
                     32 * 1024 * 1024)

    # Weights/biases: block index is (0, 0) for every grid step -> they stay
    # VMEM-resident (no re-DMA).  (pl.Buffered(1) on these would reclaim ~0.5 MB
    # of double-buffer VMEM; only worth it when tb is pushed to the VMEM edge.)
    resident = lambda shape: pl.BlockSpec(shape, lambda i: (0, 0))

    out = pl.pallas_call(
        _mlp_kernel,
        out_shape=jax.ShapeDtypeStruct((B, LANE), jnp.float32),
        grid=grid,
        in_specs=[
            pl.BlockSpec((tb, IN_DIM), lambda i: (i, 0)),   # streamed x tiles
            resident((IN_DIM, LANE)),
            resident((1, LANE)),
            resident((LANE, LANE)),
            resident((1, LANE)),
            resident((LANE, LANE)),
            resident((1, LANE)),
        ],
        out_specs=pl.BlockSpec((tb, LANE), lambda i: (i, 0)),   # lane-dense slab
        compiler_params=pltpu.CompilerParams(
            dimension_semantics=("parallel",),   # megacore split on v7x
            vmem_limit_bytes=vmem_limit,
        ),
    )(x, w1p, b1p, w2p, b2p, w3p, b3p)

    return out[:, :OUT_DIM]


def perceptron100(x_in, params, *, tile_b=2048):
    """Convenience wrapper taking raw torch-layout params (pads them per call)."""
    return perceptron100_fwd(x_in, prepare_params(params), tile_b=tile_b)


def init_params(key):
    """Deterministic init matching the torch module's parameter shapes.

    nn.Linear(in, out): weight (out, in), bias (out,); uniform(-1/sqrt(in), 1/sqrt(in)).
    """
    def linear(key, fan_in, fan_out):
        kw, kb = jax.random.split(key)
        bound = 1.0 / jnp.sqrt(fan_in)
        w = jax.random.uniform(kw, (fan_out, fan_in), jnp.float32, -bound, bound)
        b = jax.random.uniform(kb, (fan_out,), jnp.float32, -bound, bound)
        return w, b

    k1, k2, k3 = jax.random.split(key, 3)
    w1, b1 = linear(k1, IN_DIM, HIDDEN)
    w2, b2 = linear(k2, HIDDEN, HIDDEN)
    w3, b3 = linear(k3, HIDDEN, OUT_DIM)
    return (w1, b1, w2, b2, w3, b3)


def reference_forward(x_in, params):
    """Pure-JAX reference mirroring the PyTorch forward."""
    B = x_in.shape[0]
    x = x_in.reshape(B, IN_DIM)
    w1, b1, w2, b2, w3, b3 = params
    h = jnp.maximum(x @ w1.T + b1, 0.0)
    h = jnp.maximum(h @ w2.T + b2, 0.0)
    return h @ w3.T + b3


if __name__ == "__main__":
    key = jax.random.PRNGKey(0)
    k_param, k_x = jax.random.split(key)

    params = init_params(k_param)
    prepared = prepare_params(params)   # hoisted: pay transpose/pad once

    # Small MNIST-shaped batch: (B=2, C=1, 28, 28).
    x = jax.random.normal(k_x, (2, 1, 28, 28), dtype=jnp.float32)
    out = jax.block_until_ready(perceptron100_fwd(x, prepared))
    ref = reference_forward(x, params)
    assert out.shape == (2, 10), out.shape
    assert jnp.allclose(out, ref, atol=1e-4, rtol=1e-4), "mismatch vs reference"

    # Exercise the ragged-grid path (B not a multiple of the tile, grid split in 2).
    x_big = jax.random.normal(k_x, (1037, 1, 28, 28), dtype=jnp.float32)
    out_big = jax.block_until_ready(perceptron100_fwd(x_big, prepared))
    ref_big = reference_forward(x_big, params)
    assert out_big.shape == (1037, 10), out_big.shape
    assert jnp.allclose(out_big, ref_big, atol=1e-4, rtol=1e-4), "mismatch (ragged path)"

    print("KERNEL_OK")
</pallas_src>

<mosaic_0001>
module attributes {stable_mosaic.version = 11 : i64} {
  func.func @_mlp_kernel(%arg0: i32, %arg1: memref<8x784xf32, #tpu.memory_space<vmem>>, %arg2: memref<784x128xf32, #tpu.memory_space<vmem>>, %arg3: memref<1x128xf32, #tpu.memory_space<vmem>>, %arg4: memref<128x128xf32, #tpu.memory_space<vmem>>, %arg5: memref<1x128xf32, #tpu.memory_space<vmem>>, %arg6: memref<128x128xf32, #tpu.memory_space<vmem>>, %arg7: memref<1x128xf32, #tpu.memory_space<vmem>>, %arg8: memref<8x128xf32, #tpu.memory_space<vmem>>) attributes {dimension_semantics = [#tpu.dimension_semantics<parallel>], iteration_bounds = array<i64: 1>, scalar_prefetch = 0 : i64, scratch_operands = 0 : i64, tpu.core_type = #tpu.core_type<tc>, window_params = [{transform_indices = @transform_0, window_bounds = array<i64: 8, 784>}, {pipeline_mode = #tpu.pipeline_mode<synchronous>, transform_indices = @transform_1, window_bounds = array<i64: 784, 128>}, {pipeline_mode = #tpu.pipeline_mode<synchronous>, transform_indices = @transform_2, window_bounds = array<i64: 1, 128>}, {pipeline_mode = #tpu.pipeline_mode<synchronous>, transform_indices = @transform_3, window_bounds = array<i64: 128, 128>}, {pipeline_mode = #tpu.pipeline_mode<synchronous>, transform_indices = @transform_4, window_bounds = array<i64: 1, 128>}, {pipeline_mode = #tpu.pipeline_mode<synchronous>, transform_indices = @transform_5, window_bounds = array<i64: 128, 128>}, {pipeline_mode = #tpu.pipeline_mode<synchronous>, transform_indices = @transform_6, window_bounds = array<i64: 1, 128>}, {transform_indices = @transform_7, window_bounds = array<i64: 8, 128>}]} {
    %c0 = arith.constant 0 : index
    %c0_0 = arith.constant 0 : index
    %0 = vector.load %arg1[%c0, %c0_0] : memref<8x784xf32, #tpu.memory_space<vmem>>, vector<8x784xf32>
    %c0_1 = arith.constant 0 : index
    %c0_2 = arith.constant 0 : index
    %1 = vector.load %arg2[%c0_1, %c0_2] : memref<784x128xf32, #tpu.memory_space<vmem>>, vector<784x128xf32>
    %cst = arith.constant dense<0.000000e+00> : vector<8x128xf32>
    %2 = tpu.matmul %0, %1, %cst {dimension_numbers = #tpu.dot_dimension_numbers<[1], [0], [0], [1], [0, 0, 1, 1], [], []>} : vector<8x784xf32>, vector<784x128xf32>, vector<8x128xf32> -> vector<8x128xf32>
    %c0_3 = arith.constant 0 : index
    %c0_4 = arith.constant 0 : index
    %3 = vector.load %arg3[%c0_3, %c0_4] : memref<1x128xf32, #tpu.memory_space<vmem>>, vector<1x128xf32>
    %4 = vector.broadcast %3 : vector<1x128xf32> to vector<8x128xf32>
    %5 = arith.addf %2, %4 : vector<8x128xf32>
    %cst_5 = arith.constant 0.000000e+00 : f32
    %6 = vector.broadcast %cst_5 : f32 to vector<8x128xf32>
    %7 = arith.maximumf %5, %6 : vector<8x128xf32>
    %c0_6 = arith.constant 0 : index
    %c0_7 = arith.constant 0 : index
    %8 = vector.load %arg4[%c0_6, %c0_7] : memref<128x128xf32, #tpu.memory_space<vmem>>, vector<128x128xf32>
    %cst_8 = arith.constant dense<0.000000e+00> : vector<8x128xf32>
    %9 = tpu.matmul %7, %8, %cst_8 {dimension_numbers = #tpu.dot_dimension_numbers<[1], [0], [0], [1], [0, 0, 1, 1], [], []>} : vector<8x128xf32>, vector<128x128xf32>, vector<8x128xf32> -> vector<8x128xf32>
    %c0_9 = arith.constant 0 : index
    %c0_10 = arith.constant 0 : index
    %10 = vector.load %arg5[%c0_9, %c0_10] : memref<1x128xf32, #tpu.memory_space<vmem>>, vector<1x128xf32>
    %11 = vector.broadcast %10 : vector<1x128xf32> to vector<8x128xf32>
    %12 = arith.addf %9, %11 : vector<8x128xf32>
    %cst_11 = arith.constant 0.000000e+00 : f32
    %13 = vector.broadcast %cst_11 : f32 to vector<8x128xf32>
    %14 = arith.maximumf %12, %13 : vector<8x128xf32>
    %c0_12 = arith.constant 0 : index
    %c0_13 = arith.constant 0 : index
    %15 = vector.load %arg6[%c0_12, %c0_13] : memref<128x128xf32, #tpu.memory_space<vmem>>, vector<128x128xf32>
    %cst_14 = arith.constant dense<0.000000e+00> : vector<8x128xf32>
    %16 = tpu.matmul %14, %15, %cst_14 {dimension_numbers = #tpu.dot_dimension_numbers<[1], [0], [0], [1], [0, 0, 1, 1], [], []>} : vector<8x128xf32>, vector<128x128xf32>, vector<8x128xf32> -> vector<8x128xf32>
    %c0_15 = arith.constant 0 : index
    %c0_16 = arith.constant 0 : index
    %17 = vector.load %arg7[%c0_15, %c0_16] : memref<1x128xf32, #tpu.memory_space<vmem>>, vector<1x128xf32>
    %18 = vector.broadcast %17 : vector<1x128xf32> to vector<8x128xf32>
    %19 = arith.addf %16, %18 : vector<8x128xf32>
    %c0_17 = arith.constant 0 : index
    %c0_18 = arith.constant 0 : index
    %20 = vector.load %arg8[%c0_17, %c0_18] : memref<8x128xf32, #tpu.memory_space<vmem>>, vector<8x128xf32>
    tpu.vector_store %arg8[%c0_17, %c0_18], %19 {strides = array<i32>} : memref<8x128xf32, #tpu.memory_space<vmem>>, vector<8x128xf32>,
    return
  }
  func.func @transform_0(%arg0: i32) -> (i32, i32) {
    %c0_i32 = arith.constant 0 : i32
    %c0_i32_0 = arith.constant 0 : i32
    return %arg0, %c0_i32 : i32, i32
  }
  func.func @transform_1(%arg0: i32) -> (i32, i32) {
    %c0_i32 = arith.constant 0 : i32
    %c0_i32_0 = arith.constant 0 : i32
    %c0_i32_1 = arith.constant 0 : i32
    return %c0_i32, %c0_i32_0 : i32, i32
  }
  func.func @transform_2(%arg0: i32) -> (i32, i32) {
    %c0_i32 = arith.constant 0 : i32
    %c0_i32_0 = arith.constant 0 : i32
    %c0_i32_1 = arith.constant 0 : i32
    return %c0_i32, %c0_i32_0 : i32, i32
  }
  func.func @transform_3(%arg0: i32) -> (i32, i32) {
    %c0_i32 = arith.constant 0 : i32
    %c0_i32_0 = arith.constant 0 : i32
    %c0_i32_1 = arith.constant 0 : i32
    return %c0_i32, %c0_i32_0 : i32, i32
  }
  func.func @transform_4(%arg0: i32) -> (i32, i32) {
    %c0_i32 = arith.constant 0 : i32
    %c0_i32_0 = arith.constant 0 : i32
    %c0_i32_1 = arith.constant 0 : i32
    return %c0_i32, %c0_i32_0 : i32, i32
  }
  func.func @transform_5(%arg0: i32) -> (i32, i32) {
    %c0_i32 = arith.constant 0 : i32
    %c0_i32_0 = arith.constant 0 : i32
    %c0_i32_1 = arith.constant 0 : i32
    return %c0_i32, %c0_i32_0 : i32, i32
  }
  func.func @transform_6(%arg0: i32) -> (i32, i32) {
    %c0_i32 = arith.constant 0 : i32
    %c0_i32_0 = arith.constant 0 : i32
    %c0_i32_1 = arith.constant 0 : i32
    return %c0_i32, %c0_i32_0 : i32, i32
  }
  func.func @transform_7(%arg0: i32) -> (i32, i32) {
    %c0_i32 = arith.constant 0 : i32
    %c0_i32_0 = arith.constant 0 : i32
    return %arg0, %c0_i32 : i32, i32
  }
}

</mosaic_0001>

<bundles_post_ra>
// kernel: perceptron100_fwd.1
= control target key start
LH: loop header
LB: loop body
LE: loop exit
PB: predicated region body
PF: predicated region fallthrough
CT: control target
= control target key end

     0   :  { %12 = vsyncpa [#allocation3], 0  ;;  %s1406_s0 = inlined_call_operand.vmem [shape: f32[2,784], index: 0, kind: input, shape index: {}]   ;;  %s1407_s1 = inlined_call_operand.hbm [shape: f32[784,128], index: 1, kind: input, shape index: {}]   ;;  %s1408_s2 = inlined_call_operand.vmem [shape: f32[1,128], index: 2, kind: input, shape index: {}]   ;;  %s1409_s3 = inlined_call_operand.vmem [shape: f32[128,128], index: 3, kind: input, shape index: {}]   ;;  %s1410_s4 = inlined_call_operand.vmem [shape: f32[1,128], index: 4, kind: input, shape index: {}]   ;;  %s1411_s5 = inlined_call_operand.hbm [shape: f32[128,128], index: 5, kind: input, shape index: {}]   ;;  %s1412_s6 = inlined_call_operand.vmem [shape: f32[1,128], index: 6, kind: input, shape index: {}]   ;;  %s1413_s7 = inlined_call_operand.hbm [shape: f32[2,128], index: 7, kind: output, shape index: {}]  }
   0x1   :  { %13 = vsyncpa [#allocation6], 0 }
   0x2   :  { %14 = vsyncpa [#allocation4], 0  ;;  %s1208_s24 = smov [#allocation2]   ;;  %s1136_s28 = scalar_lea.hbm %s1407_s1, 12544 }
   0x3   :  { %s22_s25 = sshll.u32 %s1208_s24, 4  ;;  %p1137_p0 = scmp.ne.s32.totalorder %s1407_s1, %s1136_s28  ;;  %s23_s25 = int_to_ptr.vmem [resolvable:$true] %s22_s25 }
   0x4   :  { %p1140_p1 = scmp.lt.u32.totalorder %s1136_s28, %s1407_s1 }
   0x6   :  { %p1142_p2 = pnand %p1140_p1, %p1137_p0 }
   0x8   :  { %1145 = shalt.err (!%p1142_p2)
}
   0x9   :  { %s1146_s10 = scalar_lea.vmem %s23_s25, 12544  ;;  %p1151_p4 = scmp.lt.s32.totalorder %s23_s25, %s23_s25 }
   0xa   :  { %p1147_p3 = scmp.ne.s32.totalorder %s23_s25, %s1146_s10  ;;  %p1152_p5 = scmp.lt.s32.totalorder %s1146_s10, %s1146_s10 }
   0xc   :  { %p1153_p6 = por %p1152_p5, %p1151_p4 }
   0xe   :  { %p1154_p7 = pnand %p1153_p6, %p1147_p3 }
  0x10   :  { %1157 = shalt.err (!%p1154_p7)
}
  0x11   :  { %s1209_s11 = smov 128   ;;  %s1210_s12 = smov 8  }
  0x12   :  { %28 = dma.hbm_to_vmem [thread:$0]  %s1407_s1, 12544, %s23_s25, [#allocation3], %s1209_s11, %s1209_s11, %s1210_s12  }
  0x13   :  { %s1211_s15 = smov [#allocation5]   ;;  %s1158_s19 = scalar_lea.hbm %s1411_s5, 2048 }
  0x14   :  { %s40_s16 = sshll.u32 %s1211_s15, 4  ;;  %p1159_p8 = scmp.ne.s32.totalorder %s1411_s5, %s1158_s19  ;;  %s41_s16 = int_to_ptr.vmem [resolvable:$true] %s40_s16 }
  0x15   :  { %p1162_p9 = scmp.lt.u32.totalorder %s1158_s19, %s1411_s5 }
  0x17   :  { %p1164_p10 = pnand %p1162_p9, %p1159_p8 }
  0x19   :  { %1167 = shalt.err (!%p1164_p10)
}
  0x1a   :  { %s1168_s24 = scalar_lea.vmem %s41_s16, 2048  ;;  %p1173_p12 = scmp.lt.s32.totalorder %s41_s16, %s41_s16 }
  0x1b   :  { %p1169_p11 = scmp.ne.s32.totalorder %s41_s16, %s1168_s24  ;;  %p1174_p13 = scmp.lt.s32.totalorder %s1168_s24, %s1168_s24 }
  0x1d   :  { %p1175_p0 = por %p1174_p13, %p1173_p12 }
  0x1f   :  { %p1176_p1 = pnand %p1175_p0, %p1169_p11 }
  0x21   :  { %1179 = shalt.err (!%p1176_p1)
}
  0x22   :  { %46 = dma.hbm_to_vmem [thread:$0]  %s1411_s5, 2048, %s41_s16, [#allocation6], %s1209_s11, %s1209_s11, %s1210_s12  }
  0x23   :  { %1202 = dma.done.wait [#allocation3], 12544  }
  0x24   :  { %1203 = vsyncadd [#allocation3], 4294954752 }
  0x25   :  { %1204 = dma.done.wait [#allocation6], 2048  }
  0x26   :  { %1205 = vsyncadd [#allocation6], 4294965248  ;;  %v79_v0 = vld [vmem:[#allocation2 + $0x80] sm:$0xff]  ;;  %v80_v1 = vld [vmem:[#allocation2 + $0x88] sm:$0xff]  ;;  %v1212_v51 = vmov 1983009808   ;;  %v183_v53 = vlaneseq }
  0x27   :  { %v63_v2 = vld [vmem:[#allocation2] sm:$0xff]  ;;  %v966_v3 = vpack.c.bf16 %v80_v1, %v79_v0  ;;  %v64_v4 = vld [vmem:[#allocation2 + $0x8] sm:$0xff]  ;;  %v81_v11 = vld [vmem:[#allocation2 + $0x90] sm:$0xff]  ;;  %v181_v52 = vunpack.c.l.s4 %v1212_v51  ;;  %vm1214_vm0 = vmmov 0   ;;  %vm253_vm1 = vcmask 130048  }
  0x28   :  { %v111_v5 = vld [vmem:[#allocation2 + $0x180] sm:$0xff]  ;;  %v112_v6 = vld [vmem:[#allocation2 + $0x188] sm:$0xff]  ;;  %v968_v7 = vpack.c.bf16 %v64_v4, %v63_v2  ;;  %v82_v13 = vld [vmem:[#allocation2 + $0x98] sm:$0xff] }
  0x29   :  { %v998_v8 = vpack.c.bf16 %v112_v6, %v111_v5  ;;  %v95_v9 = vld [vmem:[#allocation2 + $0x100] sm:$0xff]  ;;  %v96_v10 = vld [vmem:[#allocation2 + $0x108] sm:$0xff]  ;;  %967 = vmatprep.subr.bf16.mxu0 %v966_v3  ;;  %v65_v14 = vld [vmem:[#allocation2 + $0x10] sm:$0xff]  ;;  %v970_v16 = vpack.c.bf16 %v82_v13, %v81_v11  ;;  %v182_v2 = vunpack.c.0.s8 %v181_v52  ;;  %v184_v3 = vshrl.u32 %v183_v53, 7 }
  0x2a   :  { %v1000_v12 = vpack.c.bf16 %v96_v10, %v95_v9  ;;  %v66_v15 = vld [vmem:[#allocation2 + $0x18] sm:$0xff]  ;;  %969 = vmatpush3.bf16.msra.mxu0 %v968_v7  ;;  %v113_v18 = vld [vmem:[#allocation2 + $0x190] sm:$0xff]  ;;  %v83_v23 = vld [vmem:[#allocation2 + $0xa0] sm:$0xff] }
  0x2b   :  { %999 = vmatprep.subr.bf16.mxu1 %v998_v8  ;;  %v972_v17 = vpack.c.bf16 %v66_v15, %v65_v14  ;;  %v114_v19 = vld [vmem:[#allocation2 + $0x198] sm:$0xff]  ;;  %v97_v20 = vld [vmem:[#allocation2 + $0x110] sm:$0xff]  ;;  %v84_v24 = vld [vmem:[#allocation2 + $0xa8] sm:$0xff]  ;;  %971 = vmatprep.subr.bf16.mxu0 %v970_v16 }
  0x2c   :  { %1001 = vmatpush3.bf16.msra.mxu1 %v1000_v12  ;;  %v1002_v21 = vpack.c.bf16 %v114_v19, %v113_v18  ;;  %v98_v22 = vld [vmem:[#allocation2 + $0x118] sm:$0xff]  ;;  %v974_v26 = vpack.c.bf16 %v84_v24, %v83_v23  ;;  %v67_v27 = vld [vmem:[#allocation2 + $0x20] sm:$0xff]  ;;  %v68_v28 = vld [vmem:[#allocation2 + $0x28] sm:$0xff] }
  0x2d   :  { %v1004_v25 = vpack.c.bf16 %v98_v22, %v97_v20  ;;  %v115_v29 = vld [vmem:[#allocation2 + $0x1a0] sm:$0xff]  ;;  %v116_v30 = vld [vmem:[#allocation2 + $0x1a8] sm:$0xff]  ;;  %v976_v33 = vpack.c.bf16 %v68_v28, %v67_v27  ;;  %v85_v35 = vld [vmem:[#allocation2 + $0xb0] sm:$0xff] }
  0x2e   :  { %1003 = vmatprep.subr.bf16.mxu1 %v1002_v21  ;;  %v99_v31 = vld [vmem:[#allocation2 + $0x120] sm:$0xff]  ;;  %v100_v32 = vld [vmem:[#allocation2 + $0x128] sm:$0xff]  ;;  %973 = vmatpush3.bf16.msra.mxu0 %v972_v17  ;;  %v1006_v34 = vpack.c.bf16 %v116_v30, %v115_v29  ;;  %v86_v36 = vld [vmem:[#allocation2 + $0xb8] sm:$0xff]  ;;  %v1283_v21 = vsub.s32 %v182_v2, %v184_v3 }
  0x2f   :  { %v69_v37 = vld [vmem:[#allocation2 + $0x30] sm:$0xff]  ;;  %975 = vmatprep.subr.bf16.mxu0 %v974_v26  ;;  %v1008_v38 = vpack.c.bf16 %v100_v32, %v99_v31  ;;  %v978_v39 = vpack.c.bf16 %v86_v36, %v85_v35  ;;  %v70_v40 = vld [vmem:[#allocation2 + $0x38] sm:$0xff]  ;;  %v87_v46 = vld [vmem:[#allocation2 + $0xc0] sm:$0xff] }
  0x30   :  { %1005 = vmatpush3.bf16.msra.mxu1 %v1004_v25  ;;  %v117_v41 = vld [vmem:[#allocation2 + $0x1b0] sm:$0xff]  ;;  %v118_v42 = vld [vmem:[#allocation2 + $0x1b8] sm:$0xff]  ;;  %v88_v47 = vld [vmem:[#allocation2 + $0xc8] sm:$0xff]  ;;  %v980_v48 = vpack.c.bf16 %v70_v40, %v69_v37 }
  0x31   :  { %1007 = vmatprep.subr.bf16.mxu1 %v1006_v34  ;;  %v1010_v43 = vpack.c.bf16 %v118_v42, %v117_v41  ;;  %v101_v44 = vld [vmem:[#allocation2 + $0x130] sm:$0xff]  ;;  %v102_v45 = vld [vmem:[#allocation2 + $0x138] sm:$0xff]  ;;  %v119_v49 = vld [vmem:[#allocation2 + $0x1c0] sm:$0xff]  ;;  %v982_v55 = vpack.c.bf16 %v88_v47, %v87_v46 }
  0x32   :  { %977 = vmatpush3.bf16.msra.mxu0 %v976_v33  ;;  %v120_v50 = vld [vmem:[#allocation2 + $0x1c8] sm:$0xff]  ;;  %v1012_v54 = vpack.c.bf16 %v102_v45, %v101_v44  ;;  %v71_v56 = vld [vmem:[#allocation2 + $0x40] sm:$0xff]  ;;  %v89_v61 = vld [vmem:[#allocation2 + $0xd0] sm:$0xff] }
  0x33   :  { %979 = vmatprep.subr.bf16.mxu0 %v978_v39  ;;  %v72_v57 = vld [vmem:[#allocation2 + $0x48] sm:$0xff]  ;;  %v103_v58 = vld [vmem:[#allocation2 + $0x140] sm:$0xff]  ;;  %v1014_v59 = vpack.c.bf16 %v120_v50, %v119_v49  ;;  %v90_v62 = vld [vmem:[#allocation2 + $0xd8] sm:$0xff] }
  0x34   :  { %1009 = vmatpush3.bf16.msra.mxu1 %v1008_v38  ;;  %v104_v60 = vld [vmem:[#allocation2 + $0x148] sm:$0xff]  ;;  %v121_v63 = vld [vmem:[#allocation2 + $0x1d0] sm:$0xff]  ;;  %v122_v0 = vld [vmem:[#allocation2 + $0x1d8] sm:$0xff]  ;;  %v984_v1 = vpack.c.bf16 %v72_v57, %v71_v56  ;;  %v986_v5 = vpack.c.bf16 %v90_v62, %v89_v61 }
  0x35   :  { %1011 = vmatprep.subr.bf16.mxu1 %v1010_v43  ;;  %v1016_v4 = vpack.c.bf16 %v104_v60, %v103_v58  ;;  %v73_v6 = vld [vmem:[#allocation2 + $0x50] sm:$0xff]  ;;  %v74_v7 = vld [vmem:[#allocation2 + $0x58] sm:$0xff]  ;;  %v1018_v9 = vpack.c.bf16 %v122_v0, %v121_v63  ;;  %v91_v11 = vld [vmem:[#allocation2 + $0xe0] sm:$0xff]  ;;  %v1213_v63 = vmov 0.0|0.0  }
  0x36   :  { %981 = vmatpush3.bf16.msra.mxu0 %v980_v48  ;;  %v105_v8 = vld [vmem:[#allocation2 + $0x150] sm:$0xff]  ;;  %v106_v10 = vld [vmem:[#allocation2 + $0x158] sm:$0xff]  ;;  %v92_v12 = vld [vmem:[#allocation2 + $0xe8] sm:$0xff]  ;;  %v988_v17 = vpack.c.bf16 %v74_v7, %v73_v6 }
  0x37   :  { %983 = vmatprep.subr.bf16.mxu0 %v982_v55  ;;  %v75_v13 = vld [vmem:[#allocation2 + $0x60] sm:$0xff]  ;;  %v76_v14 = vld [vmem:[#allocation2 + $0x68] sm:$0xff]  ;;  %v93_v20 = vld [vmem:[#allocation2 + $0xf0] sm:$0xff]  ;;  %v1020_v22 = vpack.c.bf16 %v106_v10, %v105_v8  ;;  %v990_v23 = vpack.c.bf16 %v92_v12, %v91_v11  ;;  %v1215_v10 = vmov 0.0  }
  0x38   :  { %1013 = vmatpush3.bf16.msra.mxu1 %v1012_v54  ;;  %v123_v15 = vld [vmem:[#allocation2 + $0x1e0] sm:$0xff]  ;;  %v124_v16 = vld [vmem:[#allocation2 + $0x1e8] sm:$0xff]  ;;  %v94_v25 = vld [vmem:[#allocation2 + $0xf8] sm:$0xff]  ;;  %v992_v30 = vpack.c.bf16 %v76_v14, %v75_v13 }
  0x39   :  { %1015 = vmatprep.subr.bf16.mxu1 %v1014_v59  ;;  %v107_v18 = vld [vmem:[#allocation2 + $0x160] sm:$0xff]  ;;  %v108_v19 = vld [vmem:[#allocation2 + $0x168] sm:$0xff]  ;;  %v1022_v24 = vpack.c.bf16 %v124_v16, %v123_v15  ;;  %v125_v28 = vld [vmem:[#allocation2 + $0x1f0] sm:$0xff]  ;;  %v994_v36 = vpack.c.bf16 %v94_v25, %v93_v20 }
  0x3a   :  { %985 = vmatpush3.bf16.msra.mxu0 %v984_v1  ;;  %v1124_v26 = vld [vmem:[%s1406_s0] ss:$14 sps:$4 sm:$0xff]   ;;  %v1126_v27 = vld [vmem:[%s1406_s0 + $0x1c] ss:$14 sps:$4 sm:$0xff]   ;;  %v1128_v33 = vld [vmem:[%s1406_s0 + $0x4] ss:$14 sps:$4 sm:$0xff]   ;;  %v1024_v35 = vpack.c.bf16 %v108_v19, %v107_v18 }
  0x3b   :  { %987 = vmatprep.subr.bf16.mxu0 %v986_v5  ;;  %v126_v29 = vld [vmem:[#allocation2 + $0x1f8] sm:$0xff]  ;;  %v186_v31 = vrot.slane %v1124_v26, %v1283_v21  ;;  %v200_v32 = vrot.slane %v1126_v27, %v1283_v21  ;;  %v1129_v34 = vld [vmem:[%s1406_s0 + $0x20] ss:$14 sps:$4 sm:$0xff]   ;;  %v193_v45 = vrot.slane %v1128_v33, %v1283_v21  ;;  %v1133_v7 = vld [vmem:[%s1406_s0 + $0x24] ss:$14 sps:$4 sm:$0xff]  }
  0x3c   :  { %1017 = vmatpush3.bf16.msra.mxu1 %v1016_v4  ;;  %v77_v37 = vld [vmem:[#allocation2 + $0x70] sm:$0xff]  ;;  %v78_v38 = vld [vmem:[#allocation2 + $0x78] sm:$0xff]  ;;  %v1026_v40 = vpack.c.bf16 %v126_v29, %v125_v28  ;;  %v143_v43 = vld [vmem:[#allocation2 + $0x280] sm:$0xff]  ;;  %v207_v46 = vrot.slane %v1129_v34, %v1283_v21  ;;  %v236_v16 = vrot.slane %v1133_v7, %v1283_v21 }
  0x3d   :  { %1019 = vmatprep.subr.bf16.mxu1 %v1018_v9  ;;  %v109_v39 = vld [vmem:[#allocation2 + $0x170] sm:$0xff]  ;;  %v209_v41 = vcombine.high %v186_v31, %v200_v32  ;;  %v110_v42 = vld [vmem:[#allocation2 + $0x178] sm:$0xff]  ;;  %v144_v44 = vld [vmem:[#allocation2 + $0x288] sm:$0xff]  ;;  %v996_v47 = vpack.c.bf16 %v78_v38, %v77_v37  ;;  %v208_v55 = vcombine.low %v186_v31, %v200_v32 }
  0x3e   :  { %989 = vmatpush3.bf16.msra.mxu0 %v988_v17  ;;  %v211_v48 = vcombine.high %v193_v45, %v207_v46  ;;  %v1028_v49 = vpack.c.bf16 %v110_v42, %v109_v39  ;;  %v1030_v50 = vpack.c.bf16 %v144_v44, %v143_v43  ;;  %v127_v51 = vld [vmem:[#allocation2 + $0x200] sm:$0xff]  ;;  %v128_v52 = vld [vmem:[#allocation2 + $0x208] sm:$0xff]  ;;  %v145_v53 = vld [vmem:[#allocation2 + $0x290] sm:$0xff]  ;;  %v210_v57 = vcombine.low %v193_v45, %v207_v46 }
  0x3f   :  { %991 = vmatprep.subr.bf16.mxu0 %v990_v23  ;;  %320 = vmatprep.mubr.f32.mxu0 %v209_v41  ;;  %v146_v54 = vld [vmem:[#allocation2 + $0x298] sm:$0xff]  ;;  %v1032_v56 = vpack.c.bf16 %v128_v52, %v127_v51  ;;  %v129_v59 = vld [vmem:[#allocation2 + $0x210] sm:$0xff]  ;;  %v147_v61 = vld [vmem:[#allocation2 + $0x2a0] sm:$0xff] }
  0x40   :  { %1021 = vmatpush3.bf16.msra.mxu1 %v1020_v22  ;;  %390 = vmatprep.mubr.f32.mxu1 %v211_v48  ;;  %v1034_v58 = vpack.c.bf16 %v146_v54, %v145_v53  ;;  %v130_v60 = vld [vmem:[#allocation2 + $0x218] sm:$0xff]  ;;  %v148_v62 = vld [vmem:[#allocation2 + $0x2a8] sm:$0xff]  ;;  %v131_v0 = vld [vmem:[#allocation2 + $0x220] sm:$0xff] }
  0x41   :  { %1023 = vmatprep.subr.bf16.mxu1 %v1022_v24  ;;  %v132_v1 = vld [vmem:[#allocation2 + $0x228] sm:$0xff]  ;;  %v1036_v2 = vpack.c.bf16 %v130_v60, %v129_v59  ;;  %v159_v5 = vld [vmem:[#allocation2 + $0x300] sm:$0xff]  ;;  %v1038_v6 = vpack.c.bf16 %v148_v62, %v147_v61  ;;  %v149_v11 = vld [vmem:[#allocation2 + $0x2b0] sm:$0xff] }
  0x42   :  { %993 = vmatpush3.bf16.msra.mxu0 %v992_v30  ;;  %v1130_v3 = vld [vmem:[%s1406_s0 + $0x8] ss:$14 sps:$4 sm:$0xff]   ;;  %v1132_v4 = vld [vmem:[%s1406_s0 + $0xc] ss:$14 sps:$4 sm:$0x33]   ;;  %v1040_v18 = vpack.c.bf16 %v132_v1, %v131_v0  ;;  %v151_v25 = vld [vmem:[#allocation2 + $0x2c0] sm:$0xff] }
  0x43   :  { %995 = vmatprep.subr.bf16.mxu0 %v994_v36  ;;  %v1135_v8 = vld [vmem:[%s1406_s0 + $0x28] ss:$14 sps:$4 sm:$0x33]   ;;  %v150_v12 = vld [vmem:[#allocation2 + $0x2b8] sm:$0xff]  ;;  %v222_v13 = vrot.slane %v1130_v3, %v1283_v21  ;;  %v229_v14 = vrot.slane %v1132_v4, %v1283_v21  ;;  %v135_v28 = vld [vmem:[#allocation2 + $0x240] sm:$0xff] }
  0x44   :  { %1025 = vmatpush3.bf16.msra.mxu1 %v1024_v35  ;;  %v160_v9 = vld [vmem:[#allocation2 + $0x308] sm:$0xff]  ;;  %v243_v17 = vrot.slane %v1135_v8, %v1283_v21  ;;  %v1042_v19 = vpack.c.bf16 %v150_v12, %v149_v11  ;;  %v133_v20 = vld [vmem:[#allocation2 + $0x230] sm:$0xff]  ;;  %v134_v22 = vld [vmem:[#allocation2 + $0x238] sm:$0xff] }
  0x45   :  { %1027 = vmatprep.subr.bf16.mxu1 %v1026_v40  ;;  %v1063_v15 = vpack.c.bf16 %v160_v9, %v159_v5  ;;  %v245_v23 = vcombine.high %v222_v13, %v236_v16  ;;  %v152_v26 = vld [vmem:[#allocation2 + $0x2c8] sm:$0xff]  ;;  %v1044_v27 = vpack.c.bf16 %v134_v22, %v133_v20  ;;  %v153_v30 = vld [vmem:[#allocation2 + $0x2d0] sm:$0xff]  ;;  %v154_v31 = vld [vmem:[#allocation2 + $0x2d8] sm:$0xff] }
  0x46   :  { %997 = vmatpush3.bf16.msra.mxu0 %v996_v47  ;;  %v246_v24 = vcombine.low %v229_v14, %v243_v17  ;;  %v1046_v21 = vpack.c.bf16 %v152_v26, %v151_v25  ;;  %v136_v29 = vld [vmem:[#allocation2 + $0x248] sm:$0xff]  ;;  %v1050_v33 = vpack.c.bf16 %v154_v31, %v153_v30  ;;  %v137_v34 = vld [vmem:[#allocation2 + $0x250] sm:$0xff]  ;;  %v138_v35 = vld [vmem:[#allocation2 + $0x258] sm:$0xff] }
  0x47   :  { %1031 = vmatprep.subr.bf16.mxu0 %v1030_v50  ;;  %v1048_v32 = vpack.c.bf16 %v136_v29, %v135_v28  ;;  %v155_v36 = vld [vmem:[#allocation2 + $0x2e0] sm:$0xff]  ;;  %v156_v37 = vld [vmem:[#allocation2 + $0x2e8] sm:$0xff]  ;;  %v1052_v38 = vpack.c.bf16 %v138_v35, %v137_v34  ;;  %v157_v42 = vld [vmem:[#allocation2 + $0x2f0] sm:$0xff] }
  0x48   :  { %1029 = vmatpush3.bf16.msra.mxu1 %v1028_v49  ;;  %v1054_v39 = vpack.c.bf16 %v156_v37, %v155_v36  ;;  %v139_v40 = vld [vmem:[#allocation2 + $0x260] sm:$0xff]  ;;  %v140_v41 = vld [vmem:[#allocation2 + $0x268] sm:$0xff]  ;;  %v158_v43 = vld [vmem:[#allocation2 + $0x2f8] sm:$0xff]  ;;  %v244_v49 = vcombine.low %v222_v13, %v236_v16 }
  0x49   :  { %1062 = vmatprep.subr.bf16.mxu1 %v1213_v63  ;;  %321 = vmatmul.mubr.f32.vlgmr.msra.gmra.mrb[0].mxu0 %v208_v55  ;;  %v1056_v44 = vpack.c.bf16 %v140_v41, %v139_v40  ;;  %v1058_v45 = vpack.c.bf16 %v158_v43, %v157_v42  ;;  %v141_v46 = vld [vmem:[#allocation2 + $0x270] sm:$0xff]  ;;  %v142_v47 = vld [vmem:[#allocation2 + $0x278] sm:$0xff]  ;;  %v537_v50 = vld [vmem:[%s1409_s3] sm:$0xff] }
  0x4a   :  { %1033 = vmatpush3.bf16.msra.mxu0 %v1032_v56  ;;  %460 = vmatprep.mubr.f32.mxu0 %v245_v23  ;;  %v1060_v48 = vpack.c.bf16 %v142_v47, %v141_v46  ;;  %v538_v51 = vld [vmem:[%s1409_s3 + $0x8] sm:$0xff]  ;;  %v539_v52 = vld [vmem:[%s1409_s3 + $0x10] sm:$0xff]  ;;  %v540_v54 = vld [vmem:[%s1409_s3 + $0x18] sm:$0xff] }
  0x4b   :  { %391 = vmatmul.mubr.f32.vlgmr.msra.gmra.mrb[0].mxu1 %v210_v57  ;;  %1035 = vmatprep.subr.bf16.mxu0 %v1034_v58  ;;  %v1066_v53 = vpack.c.bf16 %v538_v51, %v537_v50  ;;  %v1069_v55 = vpack.c.bf16 %v540_v54, %v539_v52  ;;  %v541_v56 = vld [vmem:[%s1409_s3 + $0x20] sm:$0xff]  ;;  %v542_v57 = vld [vmem:[%s1409_s3 + $0x28] sm:$0xff]  ;;  %v543_v59 = vld [vmem:[%s1409_s3 + $0x30] sm:$0xff] }
  0x4c   :  { %893 = vmatprep.mubr.msk.f32.mxu1 %vm1214_vm0, %v1215_v10  ;;  %1064 = vmatpush3.bf16.msra.mxu1 %v1063_v15  ;;  %v1072_v58 = vpack.c.bf16 %v542_v57, %v541_v56  ;;  %v544_v60 = vld [vmem:[%s1409_s3 + $0x38] sm:$0xff]  ;;  %v545_v62 = vld [vmem:[%s1409_s3 + $0x40] sm:$0xff]  ;;  %v546_v0 = vld [vmem:[%s1409_s3 + $0x48] sm:$0xff] }
  0x4d   :  { %1065 = vmatprep.subr.bf16.mxu1 %v1213_v63  ;;  %v1075_v61 = vpack.c.bf16 %v544_v60, %v543_v59  ;;  %v1078_v1 = vpack.c.bf16 %v546_v0, %v545_v62  ;;  %v548_v3 = vld [vmem:[%s1409_s3 + $0x58] sm:$0xff]  ;;  %v549_v5 = vld [vmem:[%s1409_s3 + $0x60] sm:$0xff]  ;;  %v551_v8 = vld [vmem:[%s1409_s3 + $0x70] sm:$0xff] }
  0x4e   :  { %1037 = vmatpush3.bf16.msra.mxu0 %v1036_v2  ;;  %v547_v2 = vld [vmem:[%s1409_s3 + $0x50] sm:$0xff]  ;;  %v552_v9 = vld [vmem:[%s1409_s3 + $0x78] sm:$0xff]  ;;  %v633_v13 = vld [vmem:[#allocation5 + $0x10] sm:$0xff] }
  0x4f   :  { %1039 = vmatprep.subr.bf16.mxu0 %v1038_v6  ;;  %894 = vmatmul.mubr.msk.f32.vlgmr.msra.gmra.mrb[2].mxu1 %vm253_vm1, %v246_v24  ;;  %v1081_v4 = vpack.c.bf16 %v548_v3, %v547_v2  ;;  %v550_v6 = vld [vmem:[%s1409_s3 + $0x68] sm:$0xff]  ;;  %v631_v11 = vld [vmem:[#allocation5] sm:$0xff]  ;;  %v632_v12 = vld [vmem:[#allocation5 + $0x8] sm:$0xff] }
  0x50   :  { %928 = vmatprep.mubr.msk.f32.mxu1 %vm1214_vm0, %v1215_v10  ;;  %1067 = vmatpush3.bf16.msra.mxu1 %v1066_v53  ;;  %v1084_v7 = vpack.c.bf16 %v550_v6, %v549_v5  ;;  %v1090_v14 = vpack.c.bf16 %v632_v12, %v631_v11  ;;  %v634_v15 = vld [vmem:[#allocation5 + $0x18] sm:$0xff]  ;;  %v635_v17 = vld [vmem:[#allocation5 + $0x20] sm:$0xff]  ;;  %v637_v20 = vld [vmem:[#allocation5 + $0x30] sm:$0xff] }
  0x51   :  { %1068 = vmatprep.subr.bf16.mxu1 %v1213_v63  ;;  %v1093_v16 = vpack.c.bf16 %v634_v15, %v633_v13  ;;  %v638_v22 = vld [vmem:[#allocation5 + $0x38] sm:$0xff]  ;;  %v639_v24 = vld [vmem:[#allocation5 + $0x40] sm:$0xff]  ;;  %v640_v25 = vld [vmem:[#allocation5 + $0x48] sm:$0xff] }
  0x52   :  { %1041 = vmatpush3.bf16.msra.mxu0 %v1040_v18  ;;  %v636_v18 = vld [vmem:[#allocation5 + $0x28] sm:$0xff]  ;;  %v1099_v23 = vpack.c.bf16 %v638_v22, %v637_v20  ;;  %v1102_v26 = vpack.c.bf16 %v640_v25, %v639_v24  ;;  %v643_v29 = vld [vmem:[#allocation5 + $0x60] sm:$0xff]  ;;  %v745_v51 = vld [vmem:[%s1410_s4] ss:$0 sm:$0xff] }
  0x53   :  { %1043 = vmatprep.subr.bf16.mxu0 %v1042_v19  ;;  %v1096_v19 = vpack.c.bf16 %v636_v18, %v635_v17  ;;  %v644_v30 = vld [vmem:[#allocation5 + $0x68] sm:$0xff]  ;;  %v746_v56 = vld [vmem:[%s1412_s6] ss:$0 sm:$0xff] }
  0x54   :  { %1070 = vmatpush3.bf16.msra.mxu1 %v1069_v55  ;;  %v1108_v31 = vpack.c.bf16 %v644_v30, %v643_v29 }
  0x55   :  { %1071 = vmatprep.subr.bf16.mxu1 %v1213_v63 }
  0x56   :  { %1045 = vmatpush3.bf16.msra.mxu0 %v1044_v27  ;;  %v641_v27 = vld [vmem:[#allocation5 + $0x50] sm:$0xff] }
  0x57   :  { %1047 = vmatprep.subr.bf16.mxu0 %v1046_v21  ;;  %v642_v21 = vld [vmem:[#allocation5 + $0x58] sm:$0xff] }
  0x58   :  { %1073 = vmatpush3.bf16.msra.mxu1 %v1072_v58  ;;  %v1105_v28 = vpack.c.bf16 %v642_v21, %v641_v27 }
  0x59   :  { %1074 = vmatprep.subr.bf16.mxu1 %v1213_v63 }
  0x5a   :  { %1049 = vmatpush3.bf16.msra.mxu0 %v1048_v32 }
  0x5b   :  { %1051 = vmatprep.subr.bf16.mxu0 %v1050_v33  ;;  %v743_v33 = vld [vmem:[%s1408_s2] ss:$0 sm:$0xff] }
  0x5c   :  { %1076 = vmatpush3.bf16.msra.mxu1 %v1075_v61 }
  0x5d   :  { %1077 = vmatprep.subr.bf16.mxu1 %v1213_v63 }
  0x5e   :  { %1053 = vmatpush3.bf16.msra.mxu0 %v1052_v38 }
  0x5f   :  { %1055 = vmatprep.subr.bf16.mxu0 %v1054_v39 }
  0x60   :  { %1079 = vmatpush3.bf16.msra.mxu1 %v1078_v1 }
  0x61   :  { %1080 = vmatprep.subr.bf16.mxu1 %v1213_v63 }
  0x62   :  { %1057 = vmatpush3.bf16.msra.mxu0 %v1056_v44 }
  0x63   :  { %1059 = vmatprep.subr.bf16.mxu0 %v1058_v45 }
  0x64   :  { %1082 = vmatpush3.bf16.msra.mxu1 %v1081_v4 }
  0x65   :  { %1083 = vmatprep.subr.bf16.mxu1 %v1213_v63 }
  0x66   :  { %1061 = vmatpush3.bf16.msra.mxu0 %v1060_v48  ;;  %v645_v48 = vld [vmem:[#allocation5 + $0x70] sm:$0xff] }
  0x67   :  { %1089 = vmatprep.subr.bf16.mxu0 %v1213_v63 }
  0x68   :  { %1085 = vmatpush3.bf16.msra.mxu1 %v1084_v7 }
  0x69   :  { %461 = vmatmul.mubr.f32.vlgmr.msra.gmra.mrb[2].mxu0 %v244_v49  ;;  %1086 = vmatprep.subr.bf16.mxu1 %v1213_v63  ;;  %v646_v49 = vld [vmem:[#allocation5 + $0x78] sm:$0xff] }
  0x6a   :  { %963 = vmatprep.mubr.msk.f32.mxu0 %vm1214_vm0, %v1215_v10  ;;  %v1087_v10 = vpack.c.bf16 %v552_v9, %v551_v8  ;;  %1091 = vmatpush3.bf16.msra.mxu0 %v1090_v14  ;;  %v1111_v50 = vpack.c.bf16 %v646_v49, %v645_v48 }
  0x6b   :  { %1092 = vmatprep.subr.bf16.mxu0 %v1213_v63 }
  0x6c   :  { %1088 = vmatpush3.bf16.msra.mxu1 %v1087_v10 }
  0x6e   :  { %1094 = vmatpush3.bf16.msra.mxu0 %v1093_v16 }
  0x6f   :  { %1095 = vmatprep.subr.bf16.mxu0 %v1213_v63 }
  0x72   :  { %1097 = vmatpush3.bf16.msra.mxu0 %v1096_v19 }
  0x73   :  { %1098 = vmatprep.subr.bf16.mxu0 %v1213_v63 }
  0x76   :  { %1100 = vmatpush3.bf16.msra.mxu0 %v1099_v23 }
  0x77   :  { %1101 = vmatprep.subr.bf16.mxu0 %v1213_v63 }
  0x7a   :  { %1103 = vmatpush3.bf16.msra.mxu0 %v1102_v26 }
  0x7b   :  { %1104 = vmatprep.subr.bf16.mxu0 %v1213_v63 }
  0x7e   :  { %1106 = vmatpush3.bf16.msra.mxu0 %v1105_v28 }
  0x7f   :  { %1107 = vmatprep.subr.bf16.mxu0 %v1213_v63 }
  0x82   :  { %1109 = vmatpush3.bf16.msra.mxu0 %v1108_v31 }
  0x83   :  { %1110 = vmatprep.subr.bf16.mxu0 %v1213_v63 }
  0x86   :  { %1112 = vmatpush3.bf16.msra.mxu0 %v1111_v50 }
 0x11c   :  { %v779_v32 = vpop.f32.mrb[0].mxu0 }
 0x11d   :  { %v780_v34 = vpop.f32.mrb[1].mxu0 }
 0x11e   :  { %v814_v35 = vpop.f32.mrb[0].mxu1  ;;  %v781_v36 = vadd.f32 %v780_v34, %v779_v32 }
 0x11f   :  { %v815_v37 = vpop.f32.mrb[1].mxu1 }
 0x120   :  { %v816_v38 = vadd.f32 %v815_v37, %v814_v35  ;;  %v323_v39 = vadd.f32 %v781_v36, %v743_v33 }
 0x122   :  { %v393_v40 = vadd.f32 %v816_v38, %v323_v39  ;;  %v532_v41 = vpop.f32.mrb[2].mxu1 }
 0x123   :  { %v895_v42 = vpop.f32.mrb[3].mxu1 }
 0x13c   :  { %v849_v43 = vpop.f32.mrb[2].mxu0 }
 0x13d   :  { %v850_v44 = vpop.f32.mrb[3].mxu0 }
 0x13e   :  { %v851_v45 = vadd.f32 %v850_v44, %v849_v43 }
 0x140   :  { %v463_v46 = vadd.f32 %v851_v45, %v393_v40 }
 0x142   :  { %v533_v47 = vadd.f32 %v532_v41, %v463_v46 }
 0x144   :  { %v536_v63 = vmax.f32 %v533_v47, 0.0 }
 0x146   :  { %929 = vmatmul.mubr.f32.vlgmr.msra.gmra.mrb[4].mxu1 %v536_v63 }
 0x219   :  { %v626_v52 = vpop.f32.mrb[4].mxu1 }
 0x21a   :  { %v627_v53 = vadd.f32 %v745_v51, %v626_v52  ;;  %v930_v54 = vpop.f32.mrb[5].mxu1 }
 0x21c   :  { %v630_v55 = vmax.f32 %v627_v53, 0.0 }
 0x21e   :  { %964 = vmatmul.mubr.f32.vlgmr.msra.gmra.mrb[4].mxu0 %v630_v55 }
 0x2f1   :  { %v720_v57 = vpop.f32.mrb[4].mxu0 }
 0x2f2   :  { %v721_v58 = vadd.f32 %v746_v56, %v720_v57  ;;  %v965_v59 = vpop.f32.mrb[5].mxu0 }
 0x2f4   :  { %724 = vst [vmem:[#allocation7] sm:$0xff] %v721_v58 }
 0x2f5   :  { %729 = vsyncadd [#allocation4], 96  ;;  %s1216_s5 = smov [#allocation7]  }
 0x2f6   :  { %s730_s26 = sshll.u32 %s1216_s5, 4  ;;  %s731_s26 = int_to_ptr.vmem [resolvable:$true] %s730_s26 }
 0x2f7   :  { %s1180_s27 = scalar_lea.vmem %s731_s26, 32  ;;  %s1184_s4 = scalar_lea.vmem %s731_s26, 128 }
 0x2f8   :  { %p1181_p2 = scmp.ne.s32.totalorder %s731_s26, %s1180_s27  ;;  %p1185_p3 = scmp.lt.s32.totalorder %s731_s26, %s731_s26 }
 0x2f9   :  { %p1186_p4 = scmp.lt.s32.totalorder %s1184_s4, %s1180_s27 }
 0x2fb   :  { %p1187_p5 = por %p1186_p4, %p1185_p3 }
 0x2fd   :  { %p1188_p6 = pnand %p1187_p5, %p1181_p2 }
 0x2ff   :  { %1191 = shalt.err (!%p1188_p6)
}
 0x300   :  { %s1192_s6 = scalar_lea.hbm %s1413_s7, 32 }
 0x301   :  { %p1193_p7 = scmp.ne.s32.totalorder %s1413_s7, %s1192_s6  ;;  %p1196_p8 = scmp.lt.u32.totalorder %s1192_s6, %s1413_s7 }
 0x303   :  { %p1198_p9 = pnand %p1196_p8, %p1193_p7 }
 0x305   :  { %1201 = shalt.err (!%p1198_p9)
}
 0x306   :  { %s1217_s11 = smov 32   ;;  %s1218_s12 = smov 2  }
 0x307   :  { %736 = dma.vmem_to_hbm [thread:$0]  %s731_s26, 32, %s1413_s7, [#allocation4], %s1217_s11, %s1217_s11, %s1218_s12  }
 0x308   :  { %1206 = dma.done.wait [#allocation4], 128  }
 0x309   :  { %1207 = vsyncadd [#allocation4], 4294967168 }
 0x30a   :  { %740 = vsyncpa [#allocation3], 1 }
 0x30b   :  { %741 = vsyncpa [#allocation6], 1 }
 0x30c   :  { %742 = vsyncpa [#allocation4], 1 }

</bundles_post_ra>
